<compile_context>
chip_gen: v7x
topology: tpu7x:2x2x1
jax: 0.10.0
libtpu: 0.0.40
codegen_flags: <defaults>
</compile_context>

<pallas_src>
import functools
import math

import jax
import jax.numpy as jnp
from jax.experimental import pallas as pl
from jax.experimental.pallas import tpu as pltpu

_VMEM_LIMIT = 48 * 1024 * 1024  # stays under v7x's 64 MiB physical VMEM


def _round_up(x, m):
    return ((x + m - 1) // m) * m


def _pad2(a, rows, cols):
    if rows == 0 and cols == 0:
        return a
    return jnp.pad(a, ((0, rows), (0, cols)))


# ----------------------------------------------------------------------------
# Fused (LayerNorm?) -> matmul(bf16, f32 acc) -> +bias -> (GELU?) -> (+residual?)
# The normalized/cast input tile is cached in VMEM scratch across column tiles.
# ----------------------------------------------------------------------------
def _fused_linear_kernel(*refs, has_ln, has_res, activation, eps):
    it = iter(refs)
    x_ref = next(it)                       # (tm, K)  f32
    w_ref = next(it)                       # (K, tn)  bf16
    b_ref = next(it)                       # (1, tn)  f32
    g_ref = next(it) if has_ln else None   # (1, K)   f32
    be_ref = next(it) if has_ln else None  # (1, K)   f32
    r_ref = next(it) if has_res else None  # (tm, tn) f32
    o_ref = next(it)                       # (tm, tn) f32
    xs_ref = next(it)                      # (tm, K)  bf16 scratch (row-tile cache)

    # Normalize / cast the row tile only once (first column tile); reuse afterwards.
    @pl.when(pl.program_id(1) == 0)
    def _():
        x = x_ref[...]
        if has_ln:
            mean = jnp.mean(x, axis=-1, keepdims=True)
            diff = x - mean
            var = jnp.mean(diff * diff, axis=-1, keepdims=True)
            x = diff * jax.lax.rsqrt(var + eps)
            x = x * g_ref[...] + be_ref[...]
        xs_ref[...] = x.astype(jnp.bfloat16)

    y = jnp.dot(xs_ref[...], w_ref[...],
                preferred_element_type=jnp.float32) + b_ref[...]
    if activation == "gelu":
        # tanh-approximate GELU  # TODO(synk): switch to exact-erf GELU if the
        # reference encoder uses torch.nn.GELU's default (erf) form.
        c = math.sqrt(2.0 / math.pi)
        y = 0.5 * y * (1.0 + jnp.tanh(c * (y + 0.044715 * y * y * y)))
    if has_res:
        y = y + r_ref[...]
    o_ref[...] = y


def fused_linear(x, w, b, *, gamma=None, beta=None, residual=None,
                 activation=None, eps=1e-6, tm_max=256, tn_max=512):
    M, K = x.shape
    N = w.shape[1]
    has_ln = gamma is not None
    has_res = residual is not None

    # Row tiling (sublane axis): multiple of 8; column tiling (lane axis): mult of 128.
    M_pad = _round_up(M, 8)
    tm = min(tm_max, M_pad)
    M_pad = _round_up(M_pad, tm)
    N_pad = _round_up(N, 128)
    tn = min(tn_max, N_pad)
    N_pad = _round_up(N_pad, tn)

    xp = _pad2(x.astype(jnp.float32), M_pad - M, 0)
    wp = _pad2(w.astype(jnp.bfloat16), 0, N_pad - N)
    bp = _pad2(b.astype(jnp.float32).reshape(1, N), 0, N_pad - N)

    inputs = [xp, wp, bp]
    in_specs = [
        pl.BlockSpec((tm, K), lambda i, j: (i, 0)),
        pl.BlockSpec((K, tn), lambda i, j: (0, j)),
        pl.BlockSpec((1, tn), lambda i, j: (0, j)),
    ]
    if has_ln:
        inputs += [gamma.astype(jnp.float32).reshape(1, K),
                   beta.astype(jnp.float32).reshape(1, K)]
        in_specs += [pl.BlockSpec((1, K), lambda i, j: (0, 0)),
                     pl.BlockSpec((1, K), lambda i, j: (0, 0))]
    if has_res:
        rp = _pad2(residual.astype(jnp.float32), M_pad - M, N_pad - N)
        inputs += [rp]
        in_specs += [pl.BlockSpec((tm, tn), lambda i, j: (i, j))]

    kernel = functools.partial(_fused_linear_kernel, has_ln=has_ln,
                               has_res=has_res, activation=activation, eps=eps)
    out = pl.pallas_call(
        kernel,
        grid=(M_pad // tm, N_pad // tn),
        in_specs=in_specs,
        out_specs=pl.BlockSpec((tm, tn), lambda i, j: (i, j)),
        out_shape=jax.ShapeDtypeStruct((M_pad, N_pad), jnp.float32),
        scratch_shapes=[pltpu.VMEM((tm, K), jnp.bfloat16)],
        compiler_params=pltpu.CompilerParams(
            # Column axis carries the row-tile cache in scratch -> "arbitrary".
            dimension_semantics=("parallel", "arbitrary"),
            vmem_limit_bytes=_VMEM_LIMIT),
    )(*inputs)
    return out[:M, :N]


# ----------------------------------------------------------------------------
# Attention: consumes fused qkv (B, N, 3*D) directly, emits (B, N, D).
# One grid step per batch element; heads split by static lane slices in-kernel.
# ----------------------------------------------------------------------------
def _attn_kernel(qkv_ref, o_ref, *, n_heads, head_dim, scale):
    qkv = qkv_ref[...]                                  # (N, 3*D) f32
    D = n_heads * head_dim
    outs = []
    for h in range(n_heads):
        q = (qkv[:, h * head_dim:(h + 1) * head_dim] * scale).astype(jnp.bfloat16)
        k = qkv[:, D + h * head_dim:D + (h + 1) * head_dim].astype(jnp.bfloat16)
        v = qkv[:, 2 * D + h * head_dim:2 * D + (h + 1) * head_dim].astype(jnp.bfloat16)
        s = jax.lax.dot_general(q, k, (((1,), (1,)), ((), ())),
                                preferred_element_type=jnp.float32)
        s = s - jnp.max(s, axis=-1, keepdims=True)
        p = jnp.exp(s)
        p = p * pl.reciprocal(jnp.sum(p, axis=-1, keepdims=True), approx=True)
        outs.append(jnp.dot(p.astype(jnp.bfloat16), v,
                            preferred_element_type=jnp.float32))
    o_ref[...] = jnp.concatenate(outs, axis=-1)         # (N, D)


def attention_pallas(qkv, n_heads):
    # TODO(synk): flash-style KV tiling (online softmax, m/l/acc scratch) for large N;
    # here the full (N, 3D) block and per-head (N, N) scores fit VMEM comfortably.
    B, N, threeD = qkv.shape
    D = threeD // 3
    hd = D // n_heads
    kernel = functools.partial(_attn_kernel, n_heads=n_heads, head_dim=hd,
                               scale=1.0 / math.sqrt(hd))
    return pl.pallas_call(
        kernel,
        grid=(B,),
        in_specs=[pl.BlockSpec((None, N, threeD), lambda b: (b, 0, 0))],
        out_specs=pl.BlockSpec((None, N, D), lambda b: (b, 0, 0)),
        out_shape=jax.ShapeDtypeStruct((B, N, D), jnp.float32),
        compiler_params=pltpu.CompilerParams(
            dimension_semantics=("parallel",),
            vmem_limit_bytes=_VMEM_LIMIT),
    )(qkv)


# ----------------------------------------------------------------------------
# Bilinear upsample (align_corners=False) as separable matmuls, channel-batched.
# ----------------------------------------------------------------------------
def _resize_kernel(ah_ref, awt_ref, m_ref, o_ref, *, c_tile):
    ah = ah_ref[...]                                    # (H, gh)
    awt = awt_ref[...]                                  # (gw, W)
    for c in range(c_tile):
        tmp = jnp.dot(ah, m_ref[c], preferred_element_type=jnp.float32)   # (H, gw)
        o_ref[c] = jnp.dot(tmp, awt, preferred_element_type=jnp.float32)  # (H, W)


def _interp_matrix(out_size, in_size):
    # Bilinear interpolation matrix matching F.interpolate(align_corners=False).
    i = jnp.arange(out_size, dtype=jnp.float32)
    scale = in_size / out_size
    src = jnp.clip((i + 0.5) * scale - 0.5, 0.0, in_size - 1.0)
    x0 = jnp.floor(src)
    w1 = src - x0
    x0i = x0.astype(jnp.int32)
    x1i = jnp.minimum(x0i + 1, in_size - 1)
    rows = jnp.arange(out_size)
    m = jnp.zeros((out_size, in_size), jnp.float32)
    m = m.at[rows, x0i].add(1.0 - w1)
    m = m.at[rows, x1i].add(w1)
    return m


def bilinear_resize_pallas(masks, out_h, out_w):
    B, C, gh, gw = masks.shape
    ah = _interp_matrix(out_h, gh)        # (out_h, gh)
    awt = _interp_matrix(out_w, gw).T     # (gw, out_w)
    BC = B * C
    c_tile = min(8, BC)
    BC_pad = _round_up(BC, c_tile)
    m_flat = masks.reshape(BC, gh, gw)
    if BC_pad != BC:
        m_flat = jnp.pad(m_flat, ((0, BC_pad - BC), (0, 0), (0, 0)))
    kernel = functools.partial(_resize_kernel, c_tile=c_tile)
    out = pl.pallas_call(
        kernel,
        grid=(BC_pad // c_tile,),
        in_specs=[
            pl.BlockSpec((out_h, gh), lambda i: (0, 0)),
            pl.BlockSpec((gw, out_w), lambda i: (0, 0)),
            pl.BlockSpec((c_tile, gh, gw), lambda i: (i, 0, 0)),
        ],
        out_specs=pl.BlockSpec((c_tile, out_h, out_w), lambda i: (i, 0, 0)),
        out_shape=jax.ShapeDtypeStruct((BC_pad, out_h, out_w), jnp.float32),
        compiler_params=pltpu.CompilerParams(
            dimension_semantics=("parallel",),
            vmem_limit_bytes=_VMEM_LIMIT),
    )(ah, awt, m_flat)
    return out[:BC].reshape(B, C, out_h, out_w)


# ----------------------------------------------------------------------------
# Parameter init (deterministic, synthetic)
# ----------------------------------------------------------------------------
def init_params(key, in_ch, patch_size, d_model, n_layers, d_mlp, n_cls, n_tokens):
    s = 0.02
    keys = jax.random.split(key, 4 + n_layers)
    patch_dim = in_ch * patch_size * patch_size
    p = {
        "patch_w": s * jax.random.normal(keys[0], (patch_dim, d_model), jnp.float32),
        "patch_b": jnp.zeros((d_model,), jnp.float32),
        "cls_token": s * jax.random.normal(keys[1], (1, 1, d_model), jnp.float32),
        "pos_embed": s * jax.random.normal(keys[2], (1, n_tokens, d_model), jnp.float32),
        "ln_f_g": jnp.ones((d_model,), jnp.float32),
        "ln_f_b": jnp.zeros((d_model,), jnp.float32),
        "head_w": s * jax.random.normal(keys[3], (d_model, n_cls), jnp.float32),
        "head_b": jnp.zeros((n_cls,), jnp.float32),
        "blocks": [],
    }
    for l in range(n_layers):
        bk = jax.random.split(keys[4 + l], 4)
        p["blocks"].append(dict(
            ln1_g=jnp.ones((d_model,), jnp.float32),
            ln1_b=jnp.zeros((d_model,), jnp.float32),
            qkv_w=s * jax.random.normal(bk[0], (d_model, 3 * d_model), jnp.float32),
            qkv_b=jnp.zeros((3 * d_model,), jnp.float32),
            proj_w=s * jax.random.normal(bk[1], (d_model, d_model), jnp.float32),
            proj_b=jnp.zeros((d_model,), jnp.float32),
            ln2_g=jnp.ones((d_model,), jnp.float32),
            ln2_b=jnp.zeros((d_model,), jnp.float32),
            fc1_w=s * jax.random.normal(bk[2], (d_model, d_mlp), jnp.float32),
            fc1_b=jnp.zeros((d_mlp,), jnp.float32),
            fc2_w=s * jax.random.normal(bk[3], (d_mlp, d_model), jnp.float32),
            fc2_b=jnp.zeros((d_model,), jnp.float32),
        ))
    return p


# ----------------------------------------------------------------------------
# Segmenter forward (composition of Pallas kernels + minimal JAX glue)
# ----------------------------------------------------------------------------
def segmenter_forward(params, im, patch_size, n_cls, n_heads):
    B, C, H_ori, W_ori = im.shape

    # padding(im, patch_size, fill_value=0)
    pad_h = (-H_ori) % patch_size
    pad_w = (-W_ori) % patch_size
    if pad_h or pad_w:
        im = jnp.pad(im, ((0, 0), (0, 0), (0, pad_h), (0, pad_w)))
    H, W = im.shape[2], im.shape[3]
    gh, gw = H // patch_size, W // patch_size
    n_patches = gh * gw

    # --- encoder: patch embedding (Conv2d(C, D, P, stride=P) == matmul on flat patches)
    D = params["patch_w"].shape[1]
    patches = im.reshape(B, C, gh, patch_size, gw, patch_size)
    patches = patches.transpose(0, 2, 4, 1, 3, 5).reshape(
        B * n_patches, C * patch_size * patch_size)
    tok = fused_linear(patches, params["patch_w"], params["patch_b"])
    tok = tok.reshape(B, n_patches, D)

    cls = jnp.broadcast_to(params["cls_token"], (B, 1, D))
    x = jnp.concatenate([cls, tok], axis=1) + params["pos_embed"]
    N = x.shape[1]

    # --- encoder: transformer blocks (LN fused into qkv/fc1, residual fused into proj/fc2)
    for blk in params["blocks"]:
        x_flat = x.reshape(B * N, D)
        qkv = fused_linear(x_flat, blk["qkv_w"], blk["qkv_b"],
                           gamma=blk["ln1_g"], beta=blk["ln1_b"])       # (B*N, 3D)
        o = attention_pallas(qkv.reshape(B, N, 3 * D), n_heads)         # (B, N, D)
        x_flat = fused_linear(o.reshape(B * N, D), blk["proj_w"], blk["proj_b"],
                              residual=x_flat)
        h = fused_linear(x_flat, blk["fc1_w"], blk["fc1_b"],
                         gamma=blk["ln2_g"], beta=blk["ln2_b"], activation="gelu")
        x_flat = fused_linear(h, blk["fc2_w"], blk["fc2_b"], residual=x_flat)
        x = x_flat.reshape(B, N, D)

    # drop extra tokens (num_extra_tokens = 1, distilled = 0), then
    # final LayerNorm fused with the linear decoder head (lane-padded output)
    x_patch = x[:, 1:].reshape(B * n_patches, D)
    masks = fused_linear(x_patch, params["head_w"], params["head_b"],
                         gamma=params["ln_f_g"], beta=params["ln_f_b"])
    masks = masks.reshape(B, gh, gw, n_cls).transpose(0, 3, 1, 2)        # (B, n_cls, gh, gw)

    # F.interpolate(..., size=(H, W), mode='bilinear') (align_corners=False)
    masks = bilinear_resize_pallas(masks, H, W)

    # unpadding to (H_ori, W_ori)
    masks = masks[:, :, :H_ori, :W_ori]
    return masks


# ----------------------------------------------------------------------------
if __name__ == "__main__":
    key = jax.random.PRNGKey(0)
    k_im, k_par = jax.random.split(key)

    B, C, H_ori, W_ori = 2, 3, 14, 13
    patch_size = 8
    d_model, n_heads, n_layers, d_mlp, n_cls = 32, 4, 2, 128, 5

    H_pad = H_ori + ((-H_ori) % patch_size)
    W_pad = W_ori + ((-W_ori) % patch_size)
    n_tokens = (H_pad // patch_size) * (W_pad // patch_size) + 1

    im = jax.random.normal(k_im, (B, C, H_ori, W_ori), jnp.float32)
    params = init_params(k_par, C, patch_size, d_model, n_layers, d_mlp, n_cls, n_tokens)

    out = segmenter_forward(params, im, patch_size, n_cls, n_heads)
    out = jax.block_until_ready(out)

    assert out.shape == (B, n_cls, H_ori, W_ori), out.shape
    assert out.dtype == jnp.float32
    assert bool(jnp.all(jnp.isfinite(out)))
    print("KERNEL_OK")
</pallas_src>

<mosaic_0001>
module attributes {stable_mosaic.version = 11 : i64} {
  func.func @_fused_linear_kernel(%arg0: i32, %arg1: i32, %arg2: memref<8x192xf32, #tpu.memory_space<vmem>>, %arg3: memref<192x128xbf16, #tpu.memory_space<vmem>>, %arg4: memref<1x128xf32, #tpu.memory_space<vmem>>, %arg5: memref<8x128xf32, #tpu.memory_space<vmem>>, %arg6: memref<8x192xbf16, #tpu.memory_space<vmem>>) attributes {dimension_semantics = [#tpu.dimension_semantics<parallel>, #tpu.dimension_semantics<arbitrary>], iteration_bounds = array<i64: 1, 1>, scalar_prefetch = 0 : i64, scratch_operands = 1 : i64, tpu.core_type = #tpu.core_type<tc>, window_params = [{transform_indices = @transform_0, window_bounds = array<i64: 8, 192>}, {transform_indices = @transform_1, window_bounds = array<i64: 192, 128>}, {transform_indices = @transform_2, window_bounds = array<i64: 1, 128>}, {transform_indices = @transform_3, window_bounds = array<i64: 8, 128>}]} {
    %c0_i32 = arith.constant 0 : i32
    %0 = arith.cmpi eq, %arg1, %c0_i32 : i32
    %1 = arith.extui %0 : i1 to i32
    %c0_i32_0 = arith.constant 0 : i32
    %2 = arith.cmpi ne, %1, %c0_i32_0 : i32
    scf.if %2 {
      %c0_8 = arith.constant 0 : index
      %c0_9 = arith.constant 0 : index
      %10 = vector.load %arg2[%c0_8, %c0_9] : memref<8x192xf32, #tpu.memory_space<vmem>>, vector<8x192xf32>
      %11 = arith.truncf %10 : vector<8x192xf32> to vector<8x192xbf16>
      %c0_10 = arith.constant 0 : index
      %c0_11 = arith.constant 0 : index
      %12 = vector.load %arg6[%c0_10, %c0_11] : memref<8x192xbf16, #tpu.memory_space<vmem>>, vector<8x192xbf16>
      tpu.vector_store %arg6[%c0_10, %c0_11], %11 {strides = array<i32>} : memref<8x192xbf16, #tpu.memory_space<vmem>>, vector<8x192xbf16>,
    } else {
    }
    %c0 = arith.constant 0 : index
    %c0_1 = arith.constant 0 : index
    %3 = vector.load %arg6[%c0, %c0_1] : memref<8x192xbf16, #tpu.memory_space<vmem>>, vector<8x192xbf16>
    %c0_2 = arith.constant 0 : index
    %c0_3 = arith.constant 0 : index
    %4 = vector.load %arg3[%c0_2, %c0_3] : memref<192x128xbf16, #tpu.memory_space<vmem>>, vector<192x128xbf16>
    %cst = arith.constant dense<0.000000e+00> : vector<8x128xf32>
    %5 = tpu.matmul %3, %4, %cst {dimension_numbers = #tpu.dot_dimension_numbers<[1], [0], [0], [1], [0, 0, 1, 1], [], []>} : vector<8x192xbf16>, vector<192x128xbf16>, vector<8x128xf32> -> vector<8x128xf32>
    %c0_4 = arith.constant 0 : index
    %c0_5 = arith.constant 0 : index
    %6 = vector.load %arg4[%c0_4, %c0_5] : memref<1x128xf32, #tpu.memory_space<vmem>>, vector<1x128xf32>
    %7 = vector.broadcast %6 : vector<1x128xf32> to vector<8x128xf32>
    %8 = arith.addf %5, %7 : vector<8x128xf32>
    %c0_6 = arith.constant 0 : index
    %c0_7 = arith.constant 0 : index
    %9 = vector.load %arg5[%c0_6, %c0_7] : memref<8x128xf32, #tpu.memory_space<vmem>>, vector<8x128xf32>
    tpu.vector_store %arg5[%c0_6, %c0_7], %8 {strides = array<i32>} : memref<8x128xf32, #tpu.memory_space<vmem>>, vector<8x128xf32>,
    return
  }
  func.func @transform_0(%arg0: i32, %arg1: i32) -> (i32, i32) {
    %c0_i32 = arith.constant 0 : i32
    %c0_i32_0 = arith.constant 0 : i32
    return %arg0, %c0_i32 : i32, i32
  }
  func.func @transform_1(%arg0: i32, %arg1: i32) -> (i32, i32) {
    %c0_i32 = arith.constant 0 : i32
    %c0_i32_0 = arith.constant 0 : i32
    return %c0_i32, %arg1 : i32, i32
  }
  func.func @transform_2(%arg0: i32, %arg1: i32) -> (i32, i32) {
    %c0_i32 = arith.constant 0 : i32
    %c0_i32_0 = arith.constant 0 : i32
    return %c0_i32, %arg1 : i32, i32
  }
  func.func @transform_3(%arg0: i32, %arg1: i32) -> (i32, i32) {
    %c0_i32 = arith.constant 0 : i32
    return %arg0, %arg1 : i32, i32
  }
}

</mosaic_0001>

<bundles_post_ra>
// kernel: tpu_custom_call.1
= control target key start
LH: loop header
LB: loop body
LE: loop exit
PB: predicated region body
PF: predicated region fallthrough
CT: control target
= control target key end

     0   :  { %8 = vsyncpa [#allocation4], 0  ;;  %s413_s0 = inlined_call_operand.hbm [shape: f32[8,192], index: 0, kind: input, shape index: {}]   ;;  %s414_s1 = inlined_call_operand.hbm [shape: bf16[192,128], index: 1, kind: input, shape index: {}]   ;;  %s415_s2 = inlined_call_operand.vmem [shape: f32[1,128], index: 2, kind: input, shape index: {}]   ;;  %s416_s3 = inlined_call_operand.hbm [shape: f32[8,128], index: 3, kind: output, shape index: {}]  }
   0x1   :  { %9 = vsyncpa [#allocation7], 0 }
   0x2   :  { %10 = vsyncpa [#allocation5], 0  ;;  %s341_s12 = smov [#allocation3]   ;;  %s342_s14 = smov [#allocation6]  }
   0x3   :  { %s17_s13 = sshll.u32 %s341_s12, 4  ;;  %s26_s15 = sshll.u32 %s342_s14, 4  ;;  %s18_s13 = int_to_ptr.vmem [resolvable:$true] %s17_s13  ;;  %s367_s15 = int_to_ptr.vmem [resolvable:$true] %s26_s15 }
   0x4   :  { %s269_s18 = scalar_lea.hbm %s413_s0, 256 }
   0x5   :  { %p270_p0 = scmp.ne.s32.totalorder %s413_s0, %s269_s18  ;;  %p273_p1 = scmp.lt.u32.totalorder %s269_s18, %s413_s0 }
   0x7   :  { %p275_p2 = pnand %p273_p1, %p270_p0 }
   0x9   :  { %278 = shalt.err (!%p275_p2)
}
   0xa   :  { %s279_s23 = scalar_lea.vmem %s18_s13, 256  ;;  %p284_p4 = scmp.lt.s32.totalorder %s18_s13, %s18_s13 }
   0xb   :  { %p280_p3 = scmp.ne.s32.totalorder %s18_s13, %s279_s23  ;;  %p285_p5 = scmp.lt.s32.totalorder %s279_s23, %s279_s23 }
   0xd   :  { %p286_p6 = por %p285_p5, %p284_p4 }
   0xf   :  { %p287_p7 = pnand %p286_p6, %p280_p3 }
  0x11   :  { %290 = shalt.err (!%p287_p7)
}
  0x12   :  { %20 = dma.hbm_to_vmem [thread:$0]  %s413_s0, 256, %s18_s13, [#allocation4]  }
  0x13   :  { %s291_s28 = scalar_lea.hbm %s414_s1, 1536 }
  0x14   :  { %p292_p8 = scmp.ne.s32.totalorder %s414_s1, %s291_s28  ;;  %p295_p9 = scmp.lt.u32.totalorder %s291_s28, %s414_s1 }
  0x16   :  { %p297_p10 = pnand %p295_p9, %p292_p8 }
  0x18   :  { %300 = shalt.err (!%p297_p10)
}
  0x19   :  { %s301_s6 = scalar_lea.vmem %s367_s15, 1536  ;;  %p306_p12 = scmp.lt.s32.totalorder %s367_s15, %s367_s15 }
  0x1a   :  { %p302_p11 = scmp.ne.s32.totalorder %s367_s15, %s301_s6  ;;  %p307_p13 = scmp.lt.s32.totalorder %s301_s6, %s301_s6 }
  0x1c   :  { %p308_p0 = por %p307_p13, %p306_p12 }
  0x1e   :  { %p309_p1 = pnand %p308_p0, %p302_p11 }
  0x20   :  { %312 = shalt.err (!%p309_p1)
}
  0x21   :  { %s343_s0 = smov 64   ;;  %s344_s7 = smov 4  }
  0x22   :  { %32 = dma.hbm_to_vmem [thread:$0]  %s414_s1, 1536, %s367_s15, [#allocation7], %s343_s0, %s343_s0, %s344_s7  }
  0x23   :  { %335 = dma.done.wait [#allocation4], 256  }
  0x24   :  { %336 = vsyncadd [#allocation4], 4294967040 }
  0x25   :  { %337 = dma.done.wait [#allocation7], 1536  }
  0x26   :  { %338 = vsyncadd [#allocation7], 4294965760  ;;  %v345_v0 = vmov 0   ;;  %v255_v1 = vld [vmem:[#allocation6] sm:$0xff]   ;;  %v256_v2 = vld [vmem:[#allocation6 + $0x8] sm:$0xff]   ;;  %vm56_vm0 = vcmask 1043456  }
  0x27   :  { %174 = vmatprep.subr.bf16.mxu0 %v345_v0  ;;  %v257_v3 = vld [vmem:[#allocation6 + $0x10] sm:$0xff]   ;;  %vm57_vm1 = vcmask 523268   ;;  %v258_v4 = vld [vmem:[#allocation6 + $0x18] sm:$0xff]   ;;  %v259_v8 = vld [vmem:[#allocation6 + $0x20] sm:$0xff]   ;;  %vm170_vm3 = vcmask 523264   ;;  %s346_s11 = smov [#allocation8]  }
  0x28   :  { %175 = vmatpush1.bf16.msra.mxu0 %v255_v1  ;;  %v46_v5 = vld [vmem:[#allocation3] sm:$0xff]  ;;  %v47_v6 = vld [vmem:[#allocation3 + $0x8] sm:$0xff]  ;;  %vm58_vm2 = vmor %vm57_vm1, %vm56_vm0  ;;  %s221_s12 = sshll.u32 %s346_s11, 4  ;;  %s222_s12 = int_to_ptr.vmem [resolvable:$true] %s221_s12 }
  0x29   :  { %176 = vmatprep.subr.bf16.mxu0 %v345_v0  ;;  %v248_v7 = vpack.c.bf16 %v47_v6, %v46_v5  ;;  %v260_v9 = vld [vmem:[#allocation6 + $0x28] sm:$0xff]   ;;  %v261_v10 = vld [vmem:[#allocation6 + $0x30] sm:$0xff]   ;;  %v262_v13 = vld [vmem:[#allocation6 + $0x38] sm:$0xff]   ;;  %s313_s13 = scalar_lea.vmem %s222_s12, 128  ;;  %p318_p3 = scmp.lt.s32.totalorder %s222_s12, %s222_s12 }
  0x2a   :  { %v263_v14 = vld [vmem:[#allocation6 + $0x40] sm:$0xff]   ;;  %v264_v15 = vld [vmem:[#allocation6 + $0x48] sm:$0xff]   ;;  %v265_v16 = vld [vmem:[#allocation6 + $0x50] sm:$0xff]   ;;  %p314_p2 = scmp.ne.s32.totalorder %s222_s12, %s313_s13  ;;  %p319_p4 = scmp.lt.s32.totalorder %s313_s13, %s313_s13 }
  0x2b   :  { %59 = vst.msk [vmem:[#allocation2] sm:$0xff] %vm58_vm2, %v248_v7  ;;  %v266_v17 = vld [vmem:[#allocation6 + $0x58] sm:$0xff]   ;;  %v232_v19 = vld [vmem:[%s415_s2] ss:$0 sm:$0xff] }
  0x2c   :  { %177 = vmatpush1.bf16.msra.mxu0 %v256_v2  ;;  %p320_p5 = por %p319_p4, %p318_p3 }
  0x2d   :  { %178 = vmatprep.subr.bf16.mxu0 %v345_v0 }
  0x2e   :  { %p321_p6 = pnand %p320_p5, %p314_p2 }
  0x30   :  { %179 = vmatpush1.bf16.msra.mxu0 %v257_v3 }
  0x31   :  { %180 = vmatprep.subr.bf16.mxu0 %v345_v0 }
  0x32   :  { %v60_v11 = vld [vmem:[#allocation2] sm:$0xff] }
  0x33   :  { %v234_v12 = vcombine.high %v60_v11, %v60_v11  ;;  %v233_v18 = vcombine.low %v60_v11, %v60_v11 }
  0x34   :  { %181 = vmatpush1.bf16.msra.mxu0 %v258_v4 }
  0x35   :  { %182 = vmatprep.subr.bf16.mxu0 %v345_v0  ;;  %247 = vmatprep.mubr.msk.bf16.mxu0 %vm170_vm3, %v234_v12 }
  0x38   :  { %183 = vmatpush1.bf16.msra.mxu0 %v259_v8 }
  0x39   :  { %184 = vmatprep.subr.bf16.mxu0 %v345_v0 }
  0x3c   :  { %185 = vmatpush1.bf16.msra.mxu0 %v260_v9 }
  0x3d   :  { %186 = vmatprep.subr.bf16.mxu0 %v345_v0 }
  0x40   :  { %187 = vmatpush1.bf16.msra.mxu0 %v261_v10 }
  0x41   :  { %188 = vmatprep.subr.bf16.mxu0 %v345_v0 }
  0x44   :  { %189 = vmatpush1.bf16.msra.mxu0 %v262_v13 }
  0x45   :  { %190 = vmatprep.subr.bf16.mxu0 %v345_v0 }
  0x48   :  { %191 = vmatpush1.bf16.msra.mxu0 %v263_v14 }
  0x49   :  { %192 = vmatprep.subr.bf16.mxu0 %v345_v0 }
  0x4c   :  { %193 = vmatpush1.bf16.msra.mxu0 %v264_v15 }
  0x4d   :  { %194 = vmatprep.subr.bf16.mxu0 %v345_v0 }
  0x50   :  { %195 = vmatpush1.bf16.msra.mxu0 %v265_v16 }
  0x51   :  { %196 = vmatprep.subr.bf16.mxu0 %v345_v0 }
  0x54   :  { %197 = vmatpush1.bf16.msra.mxu0 %v266_v17 }
  0x57   :  { %207 = vmatmul.mubr.bf16.vlgmr.msra.gmra.mrb[0].mxu0 %v233_v18 }
 0x12a   :  { %v208_v20 = vpop.f32.mrb[0].mxu0 }
 0x12b   :  { %v209_v21 = vadd.f32 %v232_v19, %v208_v20  ;;  %v210_v22 = vpop.f32.mrb[1].mxu0 }
 0x12c   :  { %v211_v23 = vpop.f32.mrb[2].mxu0 }
 0x12d   :  { %214 = vst [vmem:[#allocation8] sm:$0xff] %v209_v21  ;;  %v212_v24 = vpop.f32.mrb[3].mxu0 }
 0x12e   :  { %324 = shalt.err (!%p321_p6)
}
 0x12f   :  { %s325_s2 = scalar_lea.hbm %s416_s3, 128 }
 0x130   :  { %p326_p7 = scmp.ne.s32.totalorder %s416_s3, %s325_s2  ;;  %p329_p8 = scmp.lt.u32.totalorder %s325_s2, %s416_s3 }
 0x132   :  { %p331_p9 = pnand %p329_p8, %p326_p7 }
 0x134   :  { %334 = shalt.err (!%p331_p9)
}
 0x135   :  { %224 = dma.vmem_to_hbm [thread:$0]  %s222_s12, 128, %s416_s3, [#allocation5]  }
 0x136   :  { %339 = dma.done.wait [#allocation5], 128  }
 0x137   :  { %340 = vsyncadd [#allocation5], 4294967168 }
 0x138   :  { %228 = vsyncpa [#allocation4], 1 }
 0x139   :  { %229 = vsyncpa [#allocation7], 1 }
 0x13a   :  { %230 = vsyncpa [#allocation5], 1 }

</bundles_post_ra>
